<compile_context>
chip_gen: v7x
topology: tpu7x:2x2x1
jax: 0.10.0
libtpu: 0.0.40
codegen_flags: <defaults>
</compile_context>

<pallas_src>
import functools

import jax
import jax.numpy as jnp
from jax.experimental import pallas as pl
from jax.experimental.pallas import tpu as pltpu

LANE = 128
SUB = 16            # bf16 sublane packing -> keep row tiles multiples of 16
NEG_SLOPE = 0.01
TARGET = "transaction"
# canonical relations (src_type, etype, dst_type)
RELATIONS = (
    ("user", "u2t", TARGET),
    ("merchant", "m2t", TARGET),
    (TARGET, "t2u", "user"),
    (TARGET, "t2m", "merchant"),
)


def _round_up(x, m):
    return ((x + m - 1) // m) * m


def _pad_rows(x, rows):
    return jnp.pad(x, ((0, rows - x.shape[0]), (0, 0)))


def _pad_cols(x, cols):
    return jnp.pad(x, ((0, 0), (0, cols - x.shape[1])))


# ----------------------------------------------------------------------------
# Call A: per-source messages for the two live relations (gridless, tiny).
#   For src in {user, merchant}:
#     x1   = leaky_relu( A_t2src @ (H_tx @ W0_t2src) )        (layer 0, f32 acc)
#     msgp = (x1 @ W1_src2t) @ W_out                           (layer 1 + fused head)
#   W_out = [I_hid | W_cls] (lane-padded to 128) so call B's single matmul produces
#   both the embedding and the classifier logits.
# ----------------------------------------------------------------------------
def _source_messages_kernel(h_tx_ref, a_t2u_ref, a_t2m_ref,
                            w0_u_ref, w0_m_ref, w1_u_ref, w1_m_ref, w_out_ref,
                            msgp_ref, *, n_u):
    h_tx = h_tx_ref[...]            # bf16 [N_t, emb]
    w_out = w_out_ref[...]          # bf16 [hid, 128]

    def branch(a_ref, w0_ref, w1_ref):
        s0 = jnp.dot(h_tx, w0_ref[...], preferred_element_type=jnp.float32)
        agg0 = jnp.dot(a_ref[...], s0.astype(jnp.bfloat16),
                       preferred_element_type=jnp.float32)
        # leaky_relu on the f32 accumulator (v5e has no bf16 VALU)
        x1 = jnp.where(agg0 >= 0.0, agg0, NEG_SLOPE * agg0).astype(jnp.bfloat16)
        s1 = jnp.dot(x1, w1_ref[...], preferred_element_type=jnp.float32)
        p = jnp.dot(s1.astype(jnp.bfloat16), w_out,
                    preferred_element_type=jnp.float32)
        return p.astype(jnp.bfloat16)

    msgp_ref[:n_u, :] = branch(a_t2u_ref, w0_u_ref, w1_u_ref)
    msgp_ref[n_u:, :] = branch(a_t2m_ref, w0_m_ref, w1_m_ref)


# ----------------------------------------------------------------------------
# Call B: dst(transaction)-tiled aggregation, one matmul per tile.
#   out_tile = A_cat_tile @ msgp + b_out     ( A_cat = [A_u2t | A_m2t] )
#   columns [:hid] = embedding, [hid:hid+out] = logits.
# ----------------------------------------------------------------------------
def _dst_aggregate_kernel(a_cat_ref, msgp_ref, b_out_ref, out_ref):
    out_ref[...] = (
        jnp.dot(a_cat_ref[...], msgp_ref[...], preferred_element_type=jnp.float32)
        + b_out_ref[...]
    )


# ----------------------------------------------------------------------------
# Wrapper
# ----------------------------------------------------------------------------
@functools.partial(jax.jit, static_argnames=("tile_t",))
def base_hetero_graph_forward(params, adj_norm, features, *, tile_t=256):
    n_t, _ = features.shape
    hid = params["layer1"]["u2t"].shape[1]
    out_size = params["cls_w"].shape[1]
    dp_out = _round_up(hid + out_size, LANE)

    n_u = adj_norm["u2t"].shape[1]
    n_m = adj_norm["m2t"].shape[1]
    n_u_p = _round_up(n_u, SUB)
    n_m_p = _round_up(n_m, SUB)
    n_src_p = n_u_p + n_m_p

    tile = _round_up(min(tile_t, _round_up(n_t, SUB)), SUB)
    n_t_p = _round_up(n_t, tile)

    bf16 = jnp.bfloat16
    # Live inputs only.  HeteroEmbedding tables, layer-0 u2t/m2t weights and layer-1
    # t2u/t2m weights never influence (predictions, embedding) in this 2-layer config,
    # so they are not shipped (semantics of the returned tensors unchanged).
    h_tx = features.astype(bf16)
    a_t2u = _pad_rows(adj_norm["t2u"], n_u_p).astype(bf16)          # [n_u_p, n_t]
    a_t2m = _pad_rows(adj_norm["t2m"], n_m_p).astype(bf16)          # [n_m_p, n_t]
    a_u2t = _pad_cols(_pad_rows(adj_norm["u2t"], n_t_p), n_u_p)
    a_m2t = _pad_cols(_pad_rows(adj_norm["m2t"], n_t_p), n_m_p)
    a_cat = jnp.concatenate([a_u2t, a_m2t], axis=1).astype(bf16)    # [n_t_p, n_src_p]

    w0_u = params["layer0"]["t2u"].astype(bf16)
    w0_m = params["layer0"]["t2m"].astype(bf16)
    w1_u = params["layer1"]["u2t"].astype(bf16)
    w1_m = params["layer1"]["m2t"].astype(bf16)

    # Fused output projection: [I_hid | W_cls], zero-padded to 128 lanes.
    w_out = jnp.concatenate(
        [jnp.eye(hid, dtype=jnp.float32), params["cls_w"].astype(jnp.float32)], axis=1)
    w_out = _pad_cols(w_out, dp_out).astype(bf16)                   # [hid, dp_out]
    b_out = jnp.concatenate(
        [jnp.zeros((hid,), jnp.float32), params["cls_b"].astype(jnp.float32)])
    b_out = _pad_cols(b_out.reshape(1, -1), dp_out)                 # f32 [1, dp_out]

    vmem = pl.BlockSpec(memory_space=pltpu.MemorySpace.VMEM)
    cparams_small = pltpu.CompilerParams(vmem_limit_bytes=32 * 1024 * 1024)

    # ---- call A: per-source messages (small) ----
    msgp = pl.pallas_call(
        functools.partial(_source_messages_kernel, n_u=n_u_p),
        out_shape=jax.ShapeDtypeStruct((n_src_p, dp_out), bf16),
        in_specs=[vmem] * 8,
        out_specs=vmem,
        compiler_params=cparams_small,
    )(h_tx, a_t2u, a_t2m, w0_u, w0_m, w1_u, w1_m, w_out)

    # ---- call B: dst-tiled, megacore-parallel aggregation + fused head ----
    out = pl.pallas_call(
        _dst_aggregate_kernel,
        out_shape=jax.ShapeDtypeStruct((n_t_p, dp_out), jnp.float32),
        grid_spec=pltpu.PrefetchScalarGridSpec(
            num_scalar_prefetch=0,
            grid=(n_t_p // tile,),
            in_specs=[
                pl.BlockSpec((tile, n_src_p), lambda i: (i, 0)),     # adjacency tile
                pl.BlockSpec((n_src_p, dp_out), lambda i: (0, 0)),   # resident messages
                pl.BlockSpec((1, dp_out), lambda i: (0, 0)),         # resident bias
            ],
            out_specs=pl.BlockSpec((tile, dp_out), lambda i: (i, 0)),
        ),
        compiler_params=pltpu.CompilerParams(
            dimension_semantics=("parallel",),
            vmem_limit_bytes=32 * 1024 * 1024,
        ),
    )(a_cat, msgp, b_out)

    predictions = out[:n_t, hid:hid + out_size]
    embedding = out[:n_t, :hid]
    # infer() would additionally apply sigmoid: jax.nn.sigmoid(predictions) (elementwise glue)
    return predictions, embedding


# ----------------------------------------------------------------------------
# Graph preprocessing glue
# ----------------------------------------------------------------------------
def row_normalize(a):
    """dgl fn.mean over incoming edges -> divide each row by its in-degree (0-deg -> 0)."""
    deg = jnp.sum(a, axis=1, keepdims=True)
    return a / jnp.maximum(deg, 1.0)


# ----------------------------------------------------------------------------
# Pure-jnp f32 reference (for correctness check; computes all relations/embeddings)
# ----------------------------------------------------------------------------
def reference_forward(params, adj_norm, features):
    def leaky(x):
        return jnp.where(x >= 0.0, x, NEG_SLOPE * x)

    h = {nt: params["embed"][nt] for nt in params["embed"]}
    h[TARGET] = features

    def layer(h_in, w, act):
        out = {}
        for (src, etype, dst) in RELATIONS:
            hs = leaky(h_in[src]) if act else h_in[src]
            m = adj_norm[etype] @ (hs @ w[etype])
            out[dst] = m if dst not in out else out[dst] + m
        return out

    h = layer(h, params["layer0"], False)
    h = layer(h, params["layer1"], True)
    emb = h[TARGET]
    return emb @ params["cls_w"] + params["cls_b"], emb


# ----------------------------------------------------------------------------
# Main
# ----------------------------------------------------------------------------
if __name__ == "__main__":
    key = jax.random.PRNGKey(0)

    n_nodes = {TARGET: 20, "user": 10, "merchant": 6}
    embedding_size = 32
    hidden_size = 32
    out_size = 2

    keys = iter(jax.random.split(key, 32))

    params = {
        "embed": {
            nt: 0.1 * jax.random.normal(next(keys), (n_nodes[nt], embedding_size), jnp.float32)
            for nt in n_nodes
            if nt != TARGET
        },
        "layer0": {
            etype: 0.1 * jax.random.normal(next(keys), (embedding_size, hidden_size), jnp.float32)
            for (_, etype, _) in RELATIONS
        },
        "layer1": {
            etype: 0.1 * jax.random.normal(next(keys), (hidden_size, hidden_size), jnp.float32)
            for (_, etype, _) in RELATIONS
        },
        "cls_w": 0.1 * jax.random.normal(next(keys), (hidden_size, out_size), jnp.float32),
        "cls_b": jnp.zeros((out_size,), jnp.float32),
    }

    # Synthetic dense hetero graph: per-relation {0,1} adjacency [num_dst, num_src],
    # row-normalized (dgl fn.mean aggregation).
    adj_norm = {}
    for (src, etype, dst) in RELATIONS:
        a = jax.random.bernoulli(next(keys), 0.4, (n_nodes[dst], n_nodes[src])).astype(jnp.float32)
        adj_norm[etype] = row_normalize(a)

    # Target-node features (HeteroRGCNLayer in_size == embedding_size).
    features = jax.random.normal(next(keys), (n_nodes[TARGET], embedding_size), jnp.float32)

    predictions, embedding = base_hetero_graph_forward(
        params, adj_norm, features, tile_t=16)   # tile_t=16 -> grid of 2 at demo size
    predictions = jax.block_until_ready(predictions)
    embedding = jax.block_until_ready(embedding)

    ref_pred, ref_emb = reference_forward(params, adj_norm, features)
    assert predictions.shape == (n_nodes[TARGET], out_size)
    assert embedding.shape == (n_nodes[TARGET], hidden_size)
    # bf16 inputs on the kernel path -> compare against the f32 reference with
    # bf16-appropriate tolerances.
    assert jnp.allclose(predictions, ref_pred, atol=2e-2, rtol=2e-2)
    assert jnp.allclose(embedding, ref_emb, atol=2e-2, rtol=2e-2)

    print("KERNEL_OK")
</pallas_src>

<mosaic_0001>
module attributes {stable_mosaic.version = 11 : i64} {
  func.func @_source_messages_kernel(%arg0: memref<20x32xbf16, #tpu.memory_space<vmem>>, %arg1: memref<16x20xbf16, #tpu.memory_space<vmem>>, %arg2: memref<16x20xbf16, #tpu.memory_space<vmem>>, %arg3: memref<32x32xbf16, #tpu.memory_space<vmem>>, %arg4: memref<32x32xbf16, #tpu.memory_space<vmem>>, %arg5: memref<32x32xbf16, #tpu.memory_space<vmem>>, %arg6: memref<32x32xbf16, #tpu.memory_space<vmem>>, %arg7: memref<32x128xbf16, #tpu.memory_space<vmem>>, %arg8: memref<32x128xbf16, #tpu.memory_space<vmem>>) attributes {dimension_semantics = [], scalar_prefetch = 0 : i64, scratch_operands = 0 : i64, tpu.core_type = #tpu.core_type<tc>} {
    %c0 = arith.constant 0 : index
    %c0_0 = arith.constant 0 : index
    %0 = vector.load %arg0[%c0, %c0_0] : memref<20x32xbf16, #tpu.memory_space<vmem>>, vector<20x32xbf16>
    %c0_1 = arith.constant 0 : index
    %c0_2 = arith.constant 0 : index
    %1 = vector.load %arg7[%c0_1, %c0_2] : memref<32x128xbf16, #tpu.memory_space<vmem>>, vector<32x128xbf16>
    %c0_3 = arith.constant 0 : index
    %c0_4 = arith.constant 0 : index
    %2 = vector.load %arg3[%c0_3, %c0_4] : memref<32x32xbf16, #tpu.memory_space<vmem>>, vector<32x32xbf16>
    %cst = arith.constant dense<0.000000e+00> : vector<20x32xf32>
    %3 = tpu.matmul %0, %2, %cst {dimension_numbers = #tpu.dot_dimension_numbers<[1], [0], [0], [1], [0, 0, 1, 1], [], []>} : vector<20x32xbf16>, vector<32x32xbf16>, vector<20x32xf32> -> vector<20x32xf32>
    %c0_5 = arith.constant 0 : index
    %c0_6 = arith.constant 0 : index
    %4 = vector.load %arg1[%c0_5, %c0_6] : memref<16x20xbf16, #tpu.memory_space<vmem>>, vector<16x20xbf16>
    %5 = arith.truncf %3 : vector<20x32xf32> to vector<20x32xbf16>
    %cst_7 = arith.constant dense<0.000000e+00> : vector<16x32xf32>
    %6 = tpu.matmul %4, %5, %cst_7 {dimension_numbers = #tpu.dot_dimension_numbers<[1], [0], [0], [1], [0, 0, 1, 1], [], []>} : vector<16x20xbf16>, vector<20x32xbf16>, vector<16x32xf32> -> vector<16x32xf32>
    %cst_8 = arith.constant 0.000000e+00 : f32
    %7 = vector.broadcast %cst_8 : f32 to vector<16x32xf32>
    %8 = arith.cmpf oge, %6, %7 : vector<16x32xf32>
    %cst_9 = arith.constant 0.00999999977 : f32
    %9 = vector.broadcast %cst_9 : f32 to vector<16x32xf32>
    %10 = arith.mulf %9, %6 : vector<16x32xf32>
    %11 = arith.select %8, %6, %10 : vector<16x32xi1>, vector<16x32xf32>
    %12 = arith.truncf %11 : vector<16x32xf32> to vector<16x32xbf16>
    %c0_10 = arith.constant 0 : index
    %c0_11 = arith.constant 0 : index
    %13 = vector.load %arg5[%c0_10, %c0_11] : memref<32x32xbf16, #tpu.memory_space<vmem>>, vector<32x32xbf16>
    %cst_12 = arith.constant dense<0.000000e+00> : vector<16x32xf32>
    %14 = tpu.matmul %12, %13, %cst_12 {dimension_numbers = #tpu.dot_dimension_numbers<[1], [0], [0], [1], [0, 0, 1, 1], [], []>} : vector<16x32xbf16>, vector<32x32xbf16>, vector<16x32xf32> -> vector<16x32xf32>
    %15 = arith.truncf %14 : vector<16x32xf32> to vector<16x32xbf16>
    %cst_13 = arith.constant dense<0.000000e+00> : vector<16x128xf32>
    %16 = tpu.matmul %15, %1, %cst_13 {dimension_numbers = #tpu.dot_dimension_numbers<[1], [0], [0], [1], [0, 0, 1, 1], [], []>} : vector<16x32xbf16>, vector<32x128xbf16>, vector<16x128xf32> -> vector<16x128xf32>
    %17 = arith.truncf %16 : vector<16x128xf32> to vector<16x128xbf16>
    %c0_14 = arith.constant 0 : index
    %c0_15 = arith.constant 0 : index
    %18 = vector.load %arg8[%c0_14, %c0_15] : memref<32x128xbf16, #tpu.memory_space<vmem>>, vector<16x128xbf16>
    tpu.vector_store %arg8[%c0_14, %c0_15], %17 {strides = array<i32>} : memref<32x128xbf16, #tpu.memory_space<vmem>>, vector<16x128xbf16>,
    %c0_16 = arith.constant 0 : index
    %c0_17 = arith.constant 0 : index
    %19 = vector.load %arg4[%c0_16, %c0_17] : memref<32x32xbf16, #tpu.memory_space<vmem>>, vector<32x32xbf16>
    %cst_18 = arith.constant dense<0.000000e+00> : vector<20x32xf32>
    %20 = tpu.matmul %0, %19, %cst_18 {dimension_numbers = #tpu.dot_dimension_numbers<[1], [0], [0], [1], [0, 0, 1, 1], [], []>} : vector<20x32xbf16>, vector<32x32xbf16>, vector<20x32xf32> -> vector<20x32xf32>
    %c0_19 = arith.constant 0 : index
    %c0_20 = arith.constant 0 : index
    %21 = vector.load %arg2[%c0_19, %c0_20] : memref<16x20xbf16, #tpu.memory_space<vmem>>, vector<16x20xbf16>
    %22 = arith.truncf %20 : vector<20x32xf32> to vector<20x32xbf16>
    %cst_21 = arith.constant dense<0.000000e+00> : vector<16x32xf32>
    %23 = tpu.matmul %21, %22, %cst_21 {dimension_numbers = #tpu.dot_dimension_numbers<[1], [0], [0], [1], [0, 0, 1, 1], [], []>} : vector<16x20xbf16>, vector<20x32xbf16>, vector<16x32xf32> -> vector<16x32xf32>
    %cst_22 = arith.constant 0.000000e+00 : f32
    %24 = vector.broadcast %cst_22 : f32 to vector<16x32xf32>
    %25 = arith.cmpf oge, %23, %24 : vector<16x32xf32>
    %cst_23 = arith.constant 0.00999999977 : f32
    %26 = vector.broadcast %cst_23 : f32 to vector<16x32xf32>
    %27 = arith.mulf %26, %23 : vector<16x32xf32>
    %28 = arith.select %25, %23, %27 : vector<16x32xi1>, vector<16x32xf32>
    %29 = arith.truncf %28 : vector<16x32xf32> to vector<16x32xbf16>
    %c0_24 = arith.constant 0 : index
    %c0_25 = arith.constant 0 : index
    %30 = vector.load %arg6[%c0_24, %c0_25] : memref<32x32xbf16, #tpu.memory_space<vmem>>, vector<32x32xbf16>
    %cst_26 = arith.constant dense<0.000000e+00> : vector<16x32xf32>
    %31 = tpu.matmul %29, %30, %cst_26 {dimension_numbers = #tpu.dot_dimension_numbers<[1], [0], [0], [1], [0, 0, 1, 1], [], []>} : vector<16x32xbf16>, vector<32x32xbf16>, vector<16x32xf32> -> vector<16x32xf32>
    %32 = arith.truncf %31 : vector<16x32xf32> to vector<16x32xbf16>
    %cst_27 = arith.constant dense<0.000000e+00> : vector<16x128xf32>
    %33 = tpu.matmul %32, %1, %cst_27 {dimension_numbers = #tpu.dot_dimension_numbers<[1], [0], [0], [1], [0, 0, 1, 1], [], []>} : vector<16x32xbf16>, vector<32x128xbf16>, vector<16x128xf32> -> vector<16x128xf32>
    %34 = arith.truncf %33 : vector<16x128xf32> to vector<16x128xbf16>
    %c16 = arith.constant 16 : index
    %c0_28 = arith.constant 0 : index
    %35 = vector.load %arg8[%c16, %c0_28] : memref<32x128xbf16, #tpu.memory_space<vmem>>, vector<16x128xbf16>
    tpu.vector_store %arg8[%c16, %c0_28], %34 {strides = array<i32>} : memref<32x128xbf16, #tpu.memory_space<vmem>>, vector<16x128xbf16>,
    return
  }
}

module attributes {stable_mosaic.version = 11 : i64} {
  func.func @_dst_aggregate_kernel(%arg0: i32, %arg1: memref<16x32xbf16, #tpu.memory_space<vmem>>, %arg2: memref<32x128xbf16, #tpu.memory_space<vmem>>, %arg3: memref<1x128xf32, #tpu.memory_space<vmem>>, %arg4: memref<16x128xf32, #tpu.memory_space<vmem>>) attributes {dimension_semantics = [#tpu.dimension_semantics<parallel>], iteration_bounds = array<i64: 2>, scalar_prefetch = 0 : i64, scratch_operands = 0 : i64, tpu.core_type = #tpu.core_type<tc>, window_params = [{transform_indices = @transform_0, window_bounds = array<i64: 16, 32>}, {pipeline_mode = #tpu.pipeline_mode<synchronous>, transform_indices = @transform_1, window_bounds = array<i64: 32, 128>}, {pipeline_mode = #tpu.pipeline_mode<synchronous>, transform_indices = @transform_2, window_bounds = array<i64: 1, 128>}, {transform_indices = @transform_3, window_bounds = array<i64: 16, 128>}]} {
    %c0 = arith.constant 0 : index
    %c0_0 = arith.constant 0 : index
    %0 = vector.load %arg1[%c0, %c0_0] : memref<16x32xbf16, #tpu.memory_space<vmem>>, vector<16x32xbf16>
    %c0_1 = arith.constant 0 : index
    %c0_2 = arith.constant 0 : index
    %1 = vector.load %arg2[%c0_1, %c0_2] : memref<32x128xbf16, #tpu.memory_space<vmem>>, vector<32x128xbf16>
    %cst = arith.constant dense<0.000000e+00> : vector<16x128xf32>
    %2 = tpu.matmul %0, %1, %cst {dimension_numbers = #tpu.dot_dimension_numbers<[1], [0], [0], [1], [0, 0, 1, 1], [], []>} : vector<16x32xbf16>, vector<32x128xbf16>, vector<16x128xf32> -> vector<16x128xf32>
    %c0_3 = arith.constant 0 : index
    %c0_4 = arith.constant 0 : index
    %3 = vector.load %arg3[%c0_3, %c0_4] : memref<1x128xf32, #tpu.memory_space<vmem>>, vector<1x128xf32>
    %4 = vector.broadcast %3 : vector<1x128xf32> to vector<16x128xf32>
    %5 = arith.addf %2, %4 : vector<16x128xf32>
    %c0_5 = arith.constant 0 : index
    %c0_6 = arith.constant 0 : index
    %6 = vector.load %arg4[%c0_5, %c0_6] : memref<16x128xf32, #tpu.memory_space<vmem>>, vector<16x128xf32>
    tpu.vector_store %arg4[%c0_5, %c0_6], %5 {strides = array<i32>} : memref<16x128xf32, #tpu.memory_space<vmem>>, vector<16x128xf32>,
    return
  }
  func.func @transform_0(%arg0: i32) -> (i32, i32) {
    %c0_i32 = arith.constant 0 : i32
    %c0_i32_0 = arith.constant 0 : i32
    return %arg0, %c0_i32 : i32, i32
  }
  func.func @transform_1(%arg0: i32) -> (i32, i32) {
    %c0_i32 = arith.constant 0 : i32
    %c0_i32_0 = arith.constant 0 : i32
    %c0_i32_1 = arith.constant 0 : i32
    return %c0_i32, %c0_i32_0 : i32, i32
  }
  func.func @transform_2(%arg0: i32) -> (i32, i32) {
    %c0_i32 = arith.constant 0 : i32
    %c0_i32_0 = arith.constant 0 : i32
    %c0_i32_1 = arith.constant 0 : i32
    return %c0_i32, %c0_i32_0 : i32, i32
  }
  func.func @transform_3(%arg0: i32) -> (i32, i32) {
    %c0_i32 = arith.constant 0 : i32
    %c0_i32_0 = arith.constant 0 : i32
    return %arg0, %c0_i32 : i32, i32
  }
}

</mosaic_0001>

<bundles_post_ra>
// kernel: base_hetero_graph_forward.3
= control target key start
LH: loop header
LB: loop body
LE: loop exit
PB: predicated region body
PF: predicated region fallthrough
CT: control target
= control target key end

     0   :  { %s378_s12 = smov 0   ;;  %s404_s0 = inlined_call_operand.vmem [shape: bf16[32,32], index: 0, kind: input, shape index: {}]   ;;  %s405_s1 = inlined_call_operand.vmem [shape: bf16[32,128], index: 1, kind: input, shape index: {}]   ;;  %s406_s2 = inlined_call_operand.vmem [shape: f32[1,128], index: 2, kind: input, shape index: {}]   ;;  %s407_s3 = inlined_call_operand.vmem [shape: f32[32,128], index: 3, kind: output, shape index: {}]  }
   0x1 LB: > { %s308_s13 = sadd.s32 4294967295, %s354_s12   ;;  %p312_p0 = scmp.ge.s32.totalorder %s354_s12, 1  ;;  %s354_s12 = sphi %s378_s12, %s13_s12  }
   0x2   : > { %p138_p1 = scmp.lt.s32.totalorder %s354_s12, 3 }
   0x4   : > { %p139_p2 = pnand %p312_p0, %p138_p1 }
   0x5   : > { %v345_v0 = vld [vmem:[%s405_s1] sm:$0xff] (!%p139_p2)   ;;  %v356_v1 = vmov (!%p139_p2), 0.0   ;;  %v346_v2 = vld [vmem:[%s405_s1 + $0x8] sm:$0xff] (!%p139_p2)   ;;  %vm357_vm0 = vmmov (!%p139_p2), 0   ;;  %s313_s18 = sshll.u32 (!%p139_p2), %s308_s13, 1  ;;  %vm205_vm1 = vcmask (!%p139_p2), 261120  }
   0x6   : > { %142 = sbr.rel (%p139_p2) target bundleno = 234 (0xea), region = 32  ;;  %327 = vmatprep.subr.bf16.mxu0 (!%p139_p2), %v356_v1  ;;  %331 = vmatprep.mubr.msk.bf16.mxu0 (!%p139_p2), %vm357_vm0, %v356_v1  ;;  %p163_p3 = scmp.lt.s32.totalorder (!%p139_p2), %s313_s18, 3  ;;  %v317_v4 = vld [vmem:[%s406_s2] ss:$0 sm:$0xff] (!%p139_p2) }
   0x7   : > { %328 = vmatpush3.bf16.msra.mxu0 (!%p139_p2), %v345_v0 }
   0x8   : > { %329 = vmatprep.subr.bf16.mxu0 (!%p139_p2), %v356_v1 }
   0xb   : > { %330 = vmatpush3.bf16.msra.mxu0 (!%p139_p2), %v346_v2 }
   0xd   : > { %s409_s18 = smov (!%p163_p3, %s313_s18), 3 }
   0xe   : > { %s314_s19 = sshll.u32 %s409_s18, 2  ;;  %s316_s23 = sshll.u32 %s409_s18, 3 }
   0xf   : > { %s166_s22 = scalar_lea.vmem %s404_s0, %s314_s19  ;;  %s172_s28 = scalar_lea.vmem %s407_s3, %s316_s23 }
  0x10   : > { %v347_v3 = vld [vmem:[%s166_s22] sm:$0xff]  }
  0x11   : > { %332 = vmatmul.mubr.msk.bf16.vlgmr.msra.gmra.mrb[0].mxu0 %vm205_vm1, %v347_v3 }
  0xe4   : > { %v243_v5 = vpop.f32.mrb[0].mxu0 }
  0xe5   : > { %v244_v6 = vadd.f32 %v317_v4, %v243_v5  ;;  %v333_v7 = vpop.f32.mrb[1].mxu0 }
  0xe6   : > { %v246_v8 = vpop.f32.mrb[2].mxu0 }
  0xe7   : > { %250 = vst [vmem:[%s172_s28] sm:$0xff] %v244_v6  ;;  %v247_v9 = vadd.f32 %v317_v4, %v246_v8  ;;  %v334_v10 = vpop.f32.mrb[3].mxu0 }
  0xe9   : > { %251 = vst [vmem:[%s172_s28 + $0x8] sm:$0xff] %v247_v9 }
  0xea PF: > { %s13_s12 = sadd.s32 1, %s354_s12  }
  0xeb   : > { %p10_p4 = scmp.ge.s32.totalorder %s13_s12, 4  }
  0xed   :  { %12 = sbr.rel (!%p10_p4) target bundleno = 1 (0x1), region = 62 }

// kernel: base_hetero_graph_forward.2
= control target key start
LH: loop header
LB: loop body
LE: loop exit
PB: predicated region body
PF: predicated region fallthrough
CT: control target
= control target key end

     0   :  { %vm61_vm0 = vcmask 261120   ;;  %v703_v4 = vmov 0.0   ;;  %vm704_vm1 = vmmov 0   ;;  %vm129_vm2 = vcmask 1041408   ;;  %s834_s3 = inlined_call_operand.vmem [shape: bf16[32,32], index: 3, kind: input, shape index: {}]   ;;  %s835_s0 = inlined_call_operand.vmem [shape: bf16[20,32], index: 0, kind: input, shape index: {}]   ;;  %s836_s1 = inlined_call_operand.vmem [shape: bf16[16,20], index: 1, kind: input, shape index: {}]   ;;  %s837_s5 = inlined_call_operand.vmem [shape: bf16[32,32], index: 5, kind: input, shape index: {}]   ;;  %s838_s4 = inlined_call_operand.vmem [shape: bf16[32,32], index: 4, kind: input, shape index: {}]   ;;  %s839_s7 = inlined_call_operand.vmem [shape: bf16[32,128], index: 7, kind: input, shape index: {}]   ;;  %s840_s2 = inlined_call_operand.vmem [shape: bf16[16,20], index: 2, kind: input, shape index: {}]   ;;  %s841_s6 = inlined_call_operand.vmem [shape: bf16[32,32], index: 6, kind: input, shape index: {}]   ;;  %s842_s8 = inlined_call_operand.vmem [shape: bf16[32,128], index: 8, kind: output, shape index: {}]  }
   0x1   :  { %v689_v0 = vld [vmem:[%s834_s3] sm:$0xff]   ;;  %v690_v1 = vld [vmem:[%s834_s3 + $0x8] sm:$0xff]   ;;  %631 = vmatprep.subr.bf16.mxu1 %v703_v4  ;;  %635 = vmatprep.mubr.msk.bf16.mxu1 %vm704_vm1, %v703_v4  ;;  %vm125_vm3 = vcmask 162816  }
   0x2   :  { %623 = vmatprep.subr.bf16.mxu0 %v689_v0  ;;  %v691_v2 = vld [vmem:[%s835_s0] sm:$0xff]   ;;  %v692_v3 = vld [vmem:[%s835_s0 + $0x8] ss:$0 sps:$4 sm:$0x33]  }
   0x3   :  { %624 = vmatpush3.bf16.msra.mxu0 %v689_v0  ;;  %627 = vmatprep.mubr.msk.bf16.mxu0 %vm61_vm0, %v691_v2  ;;  %v693_v12 = vld [vmem:[%s836_s1] sm:$0xff]   ;;  %v695_v14 = vld [vmem:[%s837_s5 + $0x8] sm:$0xff]  }
   0x4   :  { %625 = vmatprep.subr.bf16.mxu0 %v690_v1  ;;  %v694_v13 = vld [vmem:[%s837_s5] sm:$0xff]   ;;  %v697_v26 = vld [vmem:[%s838_s4 + $0x8] sm:$0xff]  }
   0x5   :  { %v696_v15 = vld [vmem:[%s838_s4] sm:$0xff]   ;;  %v699_v27 = vld [vmem:[%s839_s7 + $0x8] sm:$0xff]  }
   0x6   :  { %v698_v16 = vld [vmem:[%s839_s7] sm:$0xff]   ;;  %v702_v42 = vld [vmem:[%s841_s6 + $0x8] sm:$0xff]  }
   0x7   :  { %626 = vmatpush3.bf16.msra.mxu0 %v690_v1  ;;  %v700_v40 = vld [vmem:[%s840_s2] sm:$0xff]  }
   0x8   :  { %639 = vmatprep.subr.bf16.mxu0 %v703_v4  ;;  %v701_v41 = vld [vmem:[%s841_s6] sm:$0xff]  }
   0xa   :  { %628 = vmatmul.mubr.msk.bf16.vlgmr.msra.gmra.mrb[0].mxu0 %vm61_vm0, %v692_v3 }
   0xb   :  { %643 = vmatprep.mubr.msk.bf16.mxu0 %vm704_vm1, %v703_v4  ;;  %640 = vmatpush3.bf16.msra.mxu0 %v694_v13 }
   0xc   :  { %641 = vmatprep.subr.bf16.mxu0 %v703_v4 }
   0xf   :  { %642 = vmatpush3.bf16.msra.mxu0 %v695_v14 }
  0x10   :  { %655 = vmatprep.subr.bf16.mxu0 %v696_v15 }
  0xdd   :  { %v629_v5 = vpop.f32.mrb[0].mxu0 }
  0xde   :  { %v102_v6 = vpop.f32.mrb[1].mxu0  ;;  %v119_v10 = vpack.c.bf16 %v629_v5, %v629_v5 }
  0xdf   :  { %v630_v7 = vpop.f32.mrb[2].mxu0 }
  0xe0   :  { %v105_v8 = vpop.f32.mrb[3].mxu0  ;;  %v131_v11 = vsel %vm129_vm2, %v119_v10, 0 }
  0xe1   :  { %v118_v9 = vpack.c.bf16 %v105_v8, %v102_v6 }
  0xe3   :  { %632 = vmatpush3.bf16.msra.mxu1 %v118_v9 }
  0xe4   :  { %633 = vmatprep.subr.bf16.mxu1 %v703_v4 }
  0xe7   :  { %634 = vmatpush3.bf16.msra.mxu1 %v131_v11 }
  0xe8   :  { %647 = vmatprep.subr.bf16.mxu1 %v703_v4 }
  0xea   :  { %636 = vmatmul.mubr.msk.bf16.vlgmr.msra.gmra.mrb[0].mxu1 %vm125_vm3, %v693_v12 }
  0xeb   :  { %651 = vmatprep.mubr.msk.bf16.mxu1 %vm704_vm1, %v703_v4  ;;  %648 = vmatpush3.bf16.msra.mxu1 %v698_v16 }
  0xec   :  { %649 = vmatprep.subr.bf16.mxu1 %v703_v4 }
  0xef   :  { %650 = vmatpush3.bf16.msra.mxu1 %v699_v27 }
  0xf0   :  { %663 = vmatprep.subr.bf16.mxu1 %v703_v4 }
 0x1bd   :  { %v167_v17 = vpop.f32.mrb[0].mxu1 }
 0x1be   :  { %v176_v18 = vmul.f32 0.01, %v167_v17  ;;  %v637_v19 = vpop.f32.mrb[1].mxu1  ;;  %vm174_vm4 = vcmp.ge.f32.partialorder %v167_v17, 0.0 }
 0x1bf   :  { %v170_v20 = vpop.f32.mrb[2].mxu1 }
 0x1c0   :  { %vm175_vm5 = vcmp.ge.f32.partialorder %v170_v20, 0.0  ;;  %v177_v21 = vmul.f32 0.01, %v170_v20  ;;  %v638_v22 = vpop.f32.mrb[3].mxu1  ;;  %v178_v23 = vsel %vm174_vm4, %v167_v17, %v176_v18 }
 0x1c2   :  { %v179_v24 = vsel %vm175_vm5, %v170_v20, %v177_v21 }
 0x1c3   :  { %v180_v25 = vpack.c.bf16 %v179_v24, %v178_v23 }
 0x1c5   :  { %644 = vmatmul.mubr.msk.bf16.vlgmr.msra.gmra.mrb[4].mxu0 %vm61_vm0, %v180_v25 }
 0x1c6   :  { %656 = vmatpush3.bf16.msra.mxu0 %v696_v15  ;;  %659 = vmatprep.mubr.msk.bf16.mxu0 %vm61_vm0, %v691_v2 }
 0x1c7   :  { %657 = vmatprep.subr.bf16.mxu0 %v697_v26 }
 0x1ca   :  { %658 = vmatpush3.bf16.msra.mxu0 %v697_v26 }
 0x1cb   :  { %671 = vmatprep.subr.bf16.mxu0 %v703_v4 }
 0x1cd   :  { %660 = vmatmul.mubr.msk.bf16.vlgmr.msra.gmra.mrb[8].mxu0 %vm61_vm0, %v692_v3 }
 0x1ce   :  { %675 = vmatprep.mubr.msk.bf16.mxu0 %vm704_vm1, %v703_v4  ;;  %672 = vmatpush3.bf16.msra.mxu0 %v701_v41 }
 0x1cf   :  { %673 = vmatprep.subr.bf16.mxu0 %v703_v4 }
 0x1d2   :  { %674 = vmatpush3.bf16.msra.mxu0 %v702_v42 }
 0x298   :  { %v234_v28 = vpop.f32.mrb[4].mxu0 }
 0x299   :  { %v645_v29 = vpop.f32.mrb[5].mxu0 }
 0x29a   :  { %v237_v30 = vpop.f32.mrb[6].mxu0 }
 0x29b   :  { %v241_v31 = vpack.c.bf16 %v237_v30, %v234_v28  ;;  %v646_v32 = vpop.f32.mrb[7].mxu0 }
 0x29d   :  { %652 = vmatmul.mubr.msk.bf16.vlgmr.msra.gmra.mrb[4].mxu1 %vm61_vm0, %v241_v31 }
 0x29e   :  { %667 = vmatprep.mubr.msk.bf16.mxu1 %vm704_vm1, %v703_v4 }
 0x2a0   :  { %v661_v33 = vpop.f32.mrb[8].mxu0 }
 0x2a1   :  { %v358_v34 = vpop.f32.mrb[9].mxu0  ;;  %v375_v38 = vpack.c.bf16 %v661_v33, %v661_v33 }
 0x2a2   :  { %v662_v35 = vpop.f32.mrb[10].mxu0 }
 0x2a3   :  { %v361_v36 = vpop.f32.mrb[11].mxu0  ;;  %v385_v39 = vsel %vm129_vm2, %v375_v38, 0 }
 0x2a4   :  { %v374_v37 = vpack.c.bf16 %v361_v36, %v358_v34 }
 0x2a6   :  { %664 = vmatpush3.bf16.msra.mxu1 %v374_v37 }
 0x2a7   :  { %665 = vmatprep.subr.bf16.mxu1 %v703_v4 }
 0x2aa   :  { %666 = vmatpush3.bf16.msra.mxu1 %v385_v39 }
 0x2ab   :  { %679 = vmatprep.subr.bf16.mxu1 %v703_v4 }
 0x2ad   :  { %668 = vmatmul.mubr.msk.bf16.vlgmr.msra.gmra.mrb[8].mxu1 %vm125_vm3, %v700_v40 }
 0x2ae   :  { %680 = vmatpush3.bf16.msra.mxu1 %v698_v16  ;;  %683 = vmatprep.mubr.msk.bf16.mxu1 %vm704_vm1, %v703_v4 }
 0x2af   :  { %681 = vmatprep.subr.bf16.mxu1 %v703_v4 }
 0x2b2   :  { %682 = vmatpush3.bf16.msra.mxu1 %v699_v27 }
 0x370   :  { %v291_v43 = vpop.f32.mrb[4].mxu1 }
 0x371   :  { %v653_v44 = vpop.f32.mrb[5].mxu1 }
 0x372   :  { %v294_v45 = vpop.f32.mrb[6].mxu1 }
 0x373   :  { %v589_v46 = vpack.c.bf16 %v294_v45, %v291_v43  ;;  %v654_v47 = vpop.f32.mrb[7].mxu1 }
 0x375   :  { %590 = vst [vmem:[%s842_s8] sm:$0xff] %v589_v46  }
 0x380   :  { %v421_v48 = vpop.f32.mrb[8].mxu1 }
 0x381   :  { %v430_v49 = vmul.f32 0.01, %v421_v48  ;;  %v669_v50 = vpop.f32.mrb[9].mxu1  ;;  %vm428_vm6 = vcmp.ge.f32.partialorder %v421_v48, 0.0 }
 0x382   :  { %v424_v51 = vpop.f32.mrb[10].mxu1 }
 0x383   :  { %vm429_vm7 = vcmp.ge.f32.partialorder %v424_v51, 0.0  ;;  %v431_v52 = vmul.f32 0.01, %v424_v51  ;;  %v670_v53 = vpop.f32.mrb[11].mxu1  ;;  %v432_v54 = vsel %vm428_vm6, %v421_v48, %v430_v49 }
 0x385   :  { %v433_v55 = vsel %vm429_vm7, %v424_v51, %v431_v52 }
 0x386   :  { %v434_v56 = vpack.c.bf16 %v433_v55, %v432_v54 }
 0x388   :  { %676 = vmatmul.mubr.msk.bf16.vlgmr.msra.gmra.mrb[12].mxu0 %vm61_vm0, %v434_v56 }
 0x45b   :  { %v488_v57 = vpop.f32.mrb[12].mxu0 }
 0x45c   :  { %v677_v58 = vpop.f32.mrb[13].mxu0 }
 0x45d   :  { %v491_v59 = vpop.f32.mrb[14].mxu0 }
 0x45e   :  { %v495_v60 = vpack.c.bf16 %v491_v59, %v488_v57  ;;  %v678_v61 = vpop.f32.mrb[15].mxu0 }
 0x460   :  { %684 = vmatmul.mubr.msk.bf16.vlgmr.msra.gmra.mrb[12].mxu1 %vm61_vm0, %v495_v60 }
 0x533   :  { %v533_v62 = vpop.f32.mrb[12].mxu1 }
 0x534   :  { %v685_v63 = vpop.f32.mrb[13].mxu1 }
 0x535   :  { %v536_v0 = vpop.f32.mrb[14].mxu1 }
 0x536   :  { %v594_v1 = vpack.c.bf16 %v536_v0, %v533_v62  ;;  %v686_v2 = vpop.f32.mrb[15].mxu1 }
 0x538   :  { %596 = vst [vmem:[%s842_s8 + $0x8] sm:$0xff] %v594_v1  }

</bundles_post_ra>
